<compile_context>
chip_gen: v5e
topology: v5e:2x2
jax: 0.10.0
libtpu: 0.0.40
codegen_flags: <defaults>
</compile_context>

<pallas_src>
import functools
import math

import jax
import jax.numpy as jnp
import numpy as np
from jax import lax
from jax.experimental import pallas as pl
from jax.experimental.pallas import tpu as pltpu


# --------------------------------------------------------------------------------------
# Kernel: one grid step = one (batch, q-row-tile, head)
# --------------------------------------------------------------------------------------
def _mha_head_kernel(fuse_kv, need_weights, num_heads, *refs):
    if fuse_kv:
        (xq_ref, xkv_ref, wq_ref, bq_ref, wkv_ref, bkv_ref,
         wo_ref, bo_ref) = refs[:8]
        rest = refs[8:]
    else:
        (xq_ref, xk_ref, xv_ref, wq_ref, bq_ref, wk_ref, bk_ref,
         wv_ref, bv_ref, wo_ref, bo_ref) = refs[:11]
        rest = refs[11:]

    if need_weights:
        attn_ref, w_ref, acc_ref = rest
    else:
        attn_ref, acc_ref = rest
        w_ref = None

    h = pl.program_id(2)
    last_h = pl.num_programs(2) - 1
    f32 = jnp.float32
    bf16 = jnp.bfloat16

    @pl.when(h == 0)
    def _init():
        acc_ref[...] = jnp.zeros_like(acc_ref)
        if need_weights:
            w_ref[...] = jnp.zeros_like(w_ref)

    # ---- per-head projections: E-deep contractions, bf16 operands, f32 accumulation ----
    xq = xq_ref[...].astype(bf16)                                          # (tq, E)
    # `scaling` (and its effect on the q bias) is pre-folded into wq / bq.
    q = jnp.dot(xq, wq_ref[...], preferred_element_type=f32) + bq_ref[...]  # (tq, hd)

    hd = wq_ref.shape[-1]
    if fuse_kv:
        # Fused K/V projection: one (S, E) @ (E, 2*hd) MXU pass per head.
        xkv = xkv_ref[...].astype(bf16)                                    # (S, E)
        kv = jnp.dot(xkv, wkv_ref[...],
                     preferred_element_type=f32) + bkv_ref[...]            # (S, 2*hd)
        k = kv[:, :hd]
        v = kv[:, hd:]
    else:
        k = jnp.dot(xk_ref[...].astype(bf16), wk_ref[...],
                    preferred_element_type=f32) + bk_ref[...]              # (S, hd)
        v = jnp.dot(xv_ref[...].astype(bf16), wv_ref[...],
                    preferred_element_type=f32) + bv_ref[...]              # (S, hd)

    # ---- scores = q @ k^T, contracting head_dim of both (no in-kernel k transpose) ----
    scores = lax.dot_general(q.astype(bf16), k.astype(bf16),
                             (((1,), (1,)), ((), ())),
                             preferred_element_type=f32)                   # (tq, S)

    # ---- numerically stable softmax; reciprocal seeded on the EUP ----
    m = jnp.max(scores, axis=-1, keepdims=True)
    e = jnp.exp(scores - m)
    denom = jnp.sum(e, axis=-1, keepdims=True)
    r = pl.reciprocal(denom, approx=True)
    r = r * (2.0 - denom * r)                 # one Newton step -> ~f32 accuracy
    probs = e * r                                                          # (tq, S) f32

    if need_weights:
        # Head-sum accumulates in the VMEM-resident output block; averaged at finalize.
        w_ref[...] += probs

    # ---- context and this head's (hd, E) slice of the output projection ----
    ctx = jnp.dot(probs.astype(bf16), v.astype(bf16),
                  preferred_element_type=f32)                              # (tq, hd)
    acc_ref[...] += jnp.dot(ctx.astype(bf16), wo_ref[...],
                            preferred_element_type=f32)                    # (tq, E)

    @pl.when(h == last_h)
    def _finalize():
        attn_ref[...] = (acc_ref[...] + bo_ref[...]).astype(attn_ref.dtype)
        if need_weights:
            w_ref[...] = w_ref[...] * (1.0 / num_heads)


# --------------------------------------------------------------------------------------
# Parameter init (PyTorch-convention shapes) and one-time kernel-layout preparation
# --------------------------------------------------------------------------------------
def init_multihead_attention_params(key, embed_dim):
    """Deterministic init matching the PyTorch module's parameter shapes (bias=True)."""
    k1, k2 = jax.random.split(key)
    bound_in = math.sqrt(6.0 / (embed_dim + 3 * embed_dim))     # xavier_uniform_
    in_proj_weight = jax.random.uniform(
        k1, (3 * embed_dim, embed_dim), jnp.float32, -bound_in, bound_in)
    in_proj_bias = jnp.zeros((3 * embed_dim,), jnp.float32)
    bound_out = math.sqrt(6.0 / (embed_dim + embed_dim))
    out_proj_weight = jax.random.uniform(
        k2, (embed_dim, embed_dim), jnp.float32, -bound_out, bound_out)
    out_proj_bias = jnp.zeros((embed_dim,), jnp.float32)
    return {
        "in_proj_weight": in_proj_weight,
        "in_proj_bias": in_proj_bias,
        "out_proj_weight": out_proj_weight,
        "out_proj_bias": out_proj_bias,
    }


def prepare_mha_params(params, num_heads, compute_dtype=jnp.bfloat16):
    """Pre-transpose + head-major-reshape weights ONCE (and fold `scaling` into wq/bq)."""
    W = jnp.asarray(params["in_proj_weight"])      # (3E, E)
    b = jnp.asarray(params["in_proj_bias"])        # (3E,)
    Wo = jnp.asarray(params["out_proj_weight"])    # (E, E)
    bo = jnp.asarray(params["out_proj_bias"])      # (E,)
    E = Wo.shape[0]
    H = num_heads
    hd = E // H
    scaling = float(hd) ** (-0.5)

    def per_head(Wpart, scale):
        # (E_out, E_in) -> (H, E_in, hd): pre-transposed so the kernel computes x @ W,
        # head-major leading dim so BlockSpec slices one head per grid step.
        return jnp.transpose(Wpart.reshape(H, hd, E), (0, 2, 1)) * scale

    wq = per_head(W[:E], scaling).astype(compute_dtype)              # (H, E, hd)
    wk = per_head(W[E:2 * E], 1.0).astype(compute_dtype)             # (H, E, hd)
    wv = per_head(W[2 * E:], 1.0).astype(compute_dtype)              # (H, E, hd)
    bq = (b[:E].reshape(H, 1, hd) * scaling).astype(jnp.float32)
    bk = b[E:2 * E].reshape(H, 1, hd).astype(jnp.float32)
    bv = b[2 * E:].reshape(H, 1, hd).astype(jnp.float32)

    return {
        "wq": wq, "bq": bq,
        "wk": wk, "bk": bk,
        "wv": wv, "bv": bv,
        "wkv": jnp.concatenate([wk, wv], axis=-1),                   # (H, E, 2*hd)
        "bkv": jnp.concatenate([bk, bv], axis=-1),                   # (H, 1, 2*hd)
        # out_proj: attn = ctx @ Wo.T + bo; per-head slice is (hd, E).
        "wo": jnp.transpose(Wo.reshape(E, H, hd), (1, 2, 0)).astype(compute_dtype),
        "bo": bo.reshape(1, E).astype(jnp.float32),
    }


# --------------------------------------------------------------------------------------
# Forward wrapper (layout plumbing outside, compute inside one gridded pallas_call)
# --------------------------------------------------------------------------------------
def multihead_attention_forward(prepared, query, key, value, num_heads,
                                need_weights=True):
    """Forward pass (attn_mask=None, no bias_kv, no zero_attn, no dropout).

    query: (tgt_len, bsz, E); key/value: (src_len, bsz, E).
    Returns (attn (tgt_len, bsz, E), attn_weights (bsz, tgt_len, src_len) or None).
    """
    T, B, E = query.shape
    S = key.shape[0]
    hd = E // num_heads
    assert hd * num_heads == E

    qkv_same = (query is key) and (key is value)
    kv_same = key is value
    fuse_kv = qkv_same or kv_same

    # Query-row tile (second-to-last block dim must be a multiple of 8 or the full dim).
    tq = T if T <= 128 else 128
    assert T % tq == 0, "tgt_len must be a multiple of the row tile"
    grid = (B, T // tq, num_heads)

    # (L, B, E) -> (B, L, E): per-batch row tiles become contiguous BlockSpec blocks.
    xq = jnp.transpose(query, (1, 0, 2))

    if fuse_kv:
        xkv = xq if qkv_same else jnp.transpose(key, (1, 0, 2))
        inputs = (xq, xkv,
                  prepared["wq"], prepared["bq"],
                  prepared["wkv"], prepared["bkv"],
                  prepared["wo"], prepared["bo"])
        in_specs = [
            pl.BlockSpec((None, tq, E), lambda b, i, h: (b, i, 0)),      # q row tile
            pl.BlockSpec((None, S, E), lambda b, i, h: (b, 0, 0)),       # full K/V rows
            pl.BlockSpec((None, E, hd), lambda b, i, h: (h, 0, 0)),      # wq[h]
            pl.BlockSpec((None, 1, hd), lambda b, i, h: (h, 0, 0)),      # bq[h]
            pl.BlockSpec((None, E, 2 * hd), lambda b, i, h: (h, 0, 0)),  # fused wkv[h]
            pl.BlockSpec((None, 1, 2 * hd), lambda b, i, h: (h, 0, 0)),  # fused bkv[h]
            pl.BlockSpec((None, hd, E), lambda b, i, h: (h, 0, 0)),      # wo[h]
            pl.BlockSpec((1, E), lambda b, i, h: (0, 0)),                # out bias
        ]
    else:
        xk = jnp.transpose(key, (1, 0, 2))
        xv = jnp.transpose(value, (1, 0, 2))
        inputs = (xq, xk, xv,
                  prepared["wq"], prepared["bq"],
                  prepared["wk"], prepared["bk"],
                  prepared["wv"], prepared["bv"],
                  prepared["wo"], prepared["bo"])
        in_specs = [
            pl.BlockSpec((None, tq, E), lambda b, i, h: (b, i, 0)),
            pl.BlockSpec((None, S, E), lambda b, i, h: (b, 0, 0)),
            pl.BlockSpec((None, S, E), lambda b, i, h: (b, 0, 0)),
            pl.BlockSpec((None, E, hd), lambda b, i, h: (h, 0, 0)),
            pl.BlockSpec((None, 1, hd), lambda b, i, h: (h, 0, 0)),
            pl.BlockSpec((None, E, hd), lambda b, i, h: (h, 0, 0)),
            pl.BlockSpec((None, 1, hd), lambda b, i, h: (h, 0, 0)),
            pl.BlockSpec((None, E, hd), lambda b, i, h: (h, 0, 0)),
            pl.BlockSpec((None, 1, hd), lambda b, i, h: (h, 0, 0)),
            pl.BlockSpec((None, hd, E), lambda b, i, h: (h, 0, 0)),
            pl.BlockSpec((1, E), lambda b, i, h: (0, 0)),
        ]

    attn_shape = jax.ShapeDtypeStruct((B, T, E), query.dtype)
    attn_spec = pl.BlockSpec((None, tq, E), lambda b, i, h: (b, i, 0))
    if need_weights:
        out_shape = (attn_shape, jax.ShapeDtypeStruct((B, T, S), jnp.float32))
        out_specs = (attn_spec,
                     pl.BlockSpec((None, tq, S), lambda b, i, h: (b, i, 0)))
    else:
        out_shape = attn_shape
        out_specs = attn_spec

    kernel = functools.partial(_mha_head_kernel, fuse_kv, need_weights, num_heads)

    result = pl.pallas_call(
        kernel,
        grid=grid,
        in_specs=in_specs,
        out_specs=out_specs,
        out_shape=out_shape,
        scratch_shapes=[pltpu.VMEM((tq, E), jnp.float32)],   # out-proj accumulator
        compiler_params=pltpu.CompilerParams(
            dimension_semantics=("parallel", "parallel", "arbitrary")),
    )(*inputs)

    if need_weights:
        attn_bte, attn_weights = result
    else:
        attn_bte, attn_weights = result, None

    attn = jnp.transpose(attn_bte, (1, 0, 2))   # (T, B, E)
    return attn, attn_weights


# --------------------------------------------------------------------------------------
# Pure-JAX f32 reference (PyTorch semantics) for correctness checks
# --------------------------------------------------------------------------------------
def reference_forward(params, query, key, value, num_heads):
    T, B, E = query.shape
    S = key.shape[0]
    hd = E // num_heads
    scaling = hd ** (-0.5)
    W, b = params["in_proj_weight"], params["in_proj_bias"]

    q = query @ W[:E, :].T + b[:E]
    k = key @ W[E:2 * E, :].T + b[E:2 * E]
    v = value @ W[2 * E:, :].T + b[2 * E:]
    q = q * scaling

    q = q.reshape(T, B * num_heads, hd).transpose(1, 0, 2)
    k = k.reshape(S, B * num_heads, hd).transpose(1, 0, 2)
    v = v.reshape(S, B * num_heads, hd).transpose(1, 0, 2)

    scores = jnp.einsum("btd,bsd->bts", q, k)
    probs = jax.nn.softmax(scores, axis=-1)
    attn = jnp.einsum("bts,bsd->btd", probs, v)
    attn = attn.transpose(1, 0, 2).reshape(T, B, E)
    attn = attn @ params["out_proj_weight"].T + params["out_proj_bias"]
    w = probs.reshape(B, num_heads, T, S).sum(axis=1) / num_heads
    return attn, w


# --------------------------------------------------------------------------------------
# Main
# --------------------------------------------------------------------------------------
if __name__ == "__main__":
    embed_dim = 32
    num_heads = 4
    tgt_len = 8
    src_len = 16
    bsz = 2

    root = jax.random.PRNGKey(0)
    kp, kx, kk, kv = jax.random.split(root, 4)
    params = init_multihead_attention_params(kp, embed_dim)
    prepared = prepare_mha_params(params, num_heads)

    # Kernel uses bf16 MXU operands with f32 accumulation -> compare at bf16 tolerance.
    RTOL, ATOL = 2e-2, 1e-2

    # ---- Self-attention: query is key is value (Time x Batch x Channel) ----
    x = jax.random.normal(kx, (tgt_len, bsz, embed_dim), jnp.float32)
    attn, w = multihead_attention_forward(prepared, x, x, x, num_heads)
    attn = jax.block_until_ready(attn)
    w = jax.block_until_ready(w)
    ref_attn, ref_w = reference_forward(params, x, x, x, num_heads)
    np.testing.assert_allclose(np.asarray(attn), np.asarray(ref_attn), rtol=RTOL, atol=ATOL)
    np.testing.assert_allclose(np.asarray(w), np.asarray(ref_w), rtol=RTOL, atol=ATOL)
    assert attn.shape == (tgt_len, bsz, embed_dim)
    assert w.shape == (bsz, tgt_len, tgt_len)

    # ---- Cross-attention with key is value (fused K/V projection path) ----
    kvx = jax.random.normal(kk, (src_len, bsz, embed_dim), jnp.float32)
    attn_c, w_c = multihead_attention_forward(prepared, x, kvx, kvx, num_heads)
    attn_c = jax.block_until_ready(attn_c)
    w_c = jax.block_until_ready(w_c)
    ref_attn_c, ref_w_c = reference_forward(params, x, kvx, kvx, num_heads)
    np.testing.assert_allclose(np.asarray(attn_c), np.asarray(ref_attn_c), rtol=RTOL, atol=ATOL)
    np.testing.assert_allclose(np.asarray(w_c), np.asarray(ref_w_c), rtol=RTOL, atol=ATOL)
    assert attn_c.shape == (tgt_len, bsz, embed_dim)
    assert w_c.shape == (bsz, tgt_len, src_len)

    # ---- Cross-attention with distinct key / value (general projection path) ----
    vvx = jax.random.normal(kv, (src_len, bsz, embed_dim), jnp.float32)
    attn_g, w_g = multihead_attention_forward(prepared, x, kvx, vvx, num_heads)
    attn_g = jax.block_until_ready(attn_g)
    w_g = jax.block_until_ready(w_g)
    ref_attn_g, ref_w_g = reference_forward(params, x, kvx, vvx, num_heads)
    np.testing.assert_allclose(np.asarray(attn_g), np.asarray(ref_attn_g), rtol=RTOL, atol=ATOL)
    np.testing.assert_allclose(np.asarray(w_g), np.asarray(ref_w_g), rtol=RTOL, atol=ATOL)

    # ---- need_weights=False fast path (skips the (B, T, S) HBM write entirely) ----
    attn_nw, w_nw = multihead_attention_forward(prepared, x, x, x, num_heads,
                                                need_weights=False)
    attn_nw = jax.block_until_ready(attn_nw)
    assert w_nw is None
    np.testing.assert_allclose(np.asarray(attn_nw), np.asarray(ref_attn), rtol=RTOL, atol=ATOL)

    print("KERNEL_OK")
</pallas_src>

<mosaic_0001>
module attributes {stable_mosaic.version = 11 : i64} {
  func.func @_mha_head_kernel(%arg0: i32, %arg1: i32, %arg2: i32, %arg3: memref<1x8x32xf32, #tpu.memory_space<vmem>>, %arg4: memref<1x8x32xf32, #tpu.memory_space<vmem>>, %arg5: memref<1x32x8xbf16, #tpu.memory_space<vmem>>, %arg6: memref<1x1x8xf32, #tpu.memory_space<vmem>>, %arg7: memref<1x32x16xbf16, #tpu.memory_space<vmem>>, %arg8: memref<1x1x16xf32, #tpu.memory_space<vmem>>, %arg9: memref<1x8x32xbf16, #tpu.memory_space<vmem>>, %arg10: memref<1x32xf32, #tpu.memory_space<vmem>>, %arg11: memref<1x8x32xf32, #tpu.memory_space<vmem>>, %arg12: memref<1x8x8xf32, #tpu.memory_space<vmem>>, %arg13: memref<8x32xf32, #tpu.memory_space<vmem>>) attributes {dimension_semantics = [#tpu.dimension_semantics<parallel>, #tpu.dimension_semantics<parallel>, #tpu.dimension_semantics<arbitrary>], iteration_bounds = array<i64: 2, 1, 4>, scalar_prefetch = 0 : i64, scratch_operands = 1 : i64, tpu.core_type = #tpu.core_type<tc>, window_params = [{transform_indices = @transform_0, window_bounds = array<i64: 1, 8, 32>}, {transform_indices = @transform_1, window_bounds = array<i64: 1, 8, 32>}, {transform_indices = @transform_2, window_bounds = array<i64: 1, 32, 8>}, {transform_indices = @transform_3, window_bounds = array<i64: 1, 1, 8>}, {transform_indices = @transform_4, window_bounds = array<i64: 1, 32, 16>}, {transform_indices = @transform_5, window_bounds = array<i64: 1, 1, 16>}, {transform_indices = @transform_6, window_bounds = array<i64: 1, 8, 32>}, {pipeline_mode = #tpu.pipeline_mode<synchronous>, transform_indices = @transform_7, window_bounds = array<i64: 1, 32>}, {transform_indices = @transform_8, window_bounds = array<i64: 1, 8, 32>}, {transform_indices = @transform_9, window_bounds = array<i64: 1, 8, 8>}]} {
    %c0_i32 = arith.constant 0 : i32
    %0 = arith.cmpi eq, %arg2, %c0_i32 : i32
    %1 = arith.extui %0 : i1 to i32
    %c0_i32_0 = arith.constant 0 : i32
    %2 = arith.cmpi ne, %1, %c0_i32_0 : i32
    scf.if %2 {
      %cst_39 = arith.constant 0.000000e+00 : f32
      %61 = vector.broadcast %cst_39 : f32 to vector<8x32xf32>
      %c0_40 = arith.constant 0 : index
      %c0_41 = arith.constant 0 : index
      %62 = vector.load %arg13[%c0_40, %c0_41] : memref<8x32xf32, #tpu.memory_space<vmem>>, vector<8x32xf32>
      tpu.vector_store %arg13[%c0_40, %c0_41], %61 {strides = array<i32>} : memref<8x32xf32, #tpu.memory_space<vmem>>, vector<8x32xf32>,
      %cst_42 = arith.constant 0.000000e+00 : f32
      %63 = vector.broadcast %cst_42 : f32 to vector<8x8xf32>
      %c0_43 = arith.constant 0 : index
      %c0_44 = arith.constant 0 : index
      %c0_45 = arith.constant 0 : index
      %64 = vector.load %arg12[%c0_43, %c0_44, %c0_45] : memref<1x8x8xf32, #tpu.memory_space<vmem>>, vector<1x8x8xf32>
      %65 = vector.shape_cast %64 : vector<1x8x8xf32> to vector<8x8xf32>
      %66 = vector.shape_cast %63 : vector<8x8xf32> to vector<1x8x8xf32>
      tpu.vector_store %arg12[%c0_43, %c0_44, %c0_45], %66 {strides = array<i32>} : memref<1x8x8xf32, #tpu.memory_space<vmem>>, vector<1x8x8xf32>,
    } else {
    }
    %c0 = arith.constant 0 : index
    %c0_1 = arith.constant 0 : index
    %c0_2 = arith.constant 0 : index
    %3 = vector.load %arg3[%c0, %c0_1, %c0_2] : memref<1x8x32xf32, #tpu.memory_space<vmem>>, vector<1x8x32xf32>
    %4 = vector.shape_cast %3 : vector<1x8x32xf32> to vector<8x32xf32>
    %5 = arith.truncf %4 : vector<8x32xf32> to vector<8x32xbf16>
    %c0_3 = arith.constant 0 : index
    %c0_4 = arith.constant 0 : index
    %c0_5 = arith.constant 0 : index
    %6 = vector.load %arg5[%c0_3, %c0_4, %c0_5] : memref<1x32x8xbf16, #tpu.memory_space<vmem>>, vector<1x32x8xbf16>
    %7 = vector.shape_cast %6 : vector<1x32x8xbf16> to vector<32x8xbf16>
    %cst = arith.constant dense<0.000000e+00> : vector<8x8xf32>
    %8 = tpu.matmul %5, %7, %cst {dimension_numbers = #tpu.dot_dimension_numbers<[1], [0], [0], [1], [0, 0, 1, 1], [], []>} : vector<8x32xbf16>, vector<32x8xbf16>, vector<8x8xf32> -> vector<8x8xf32>
    %c0_6 = arith.constant 0 : index
    %c0_7 = arith.constant 0 : index
    %c0_8 = arith.constant 0 : index
    %9 = vector.load %arg6[%c0_6, %c0_7, %c0_8] : memref<1x1x8xf32, #tpu.memory_space<vmem>>, vector<1x1x8xf32>
    %10 = vector.shape_cast %9 : vector<1x1x8xf32> to vector<1x8xf32>
    %11 = vector.broadcast %10 : vector<1x8xf32> to vector<8x8xf32>
    %12 = arith.addf %8, %11 : vector<8x8xf32>
    %c0_9 = arith.constant 0 : index
    %c0_10 = arith.constant 0 : index
    %c0_11 = arith.constant 0 : index
    %13 = vector.load %arg4[%c0_9, %c0_10, %c0_11] : memref<1x8x32xf32, #tpu.memory_space<vmem>>, vector<1x8x32xf32>
    %14 = vector.shape_cast %13 : vector<1x8x32xf32> to vector<8x32xf32>
    %15 = arith.truncf %14 : vector<8x32xf32> to vector<8x32xbf16>
    %c0_12 = arith.constant 0 : index
    %c0_13 = arith.constant 0 : index
    %c0_14 = arith.constant 0 : index
    %16 = vector.load %arg7[%c0_12, %c0_13, %c0_14] : memref<1x32x16xbf16, #tpu.memory_space<vmem>>, vector<1x32x16xbf16>
    %17 = vector.shape_cast %16 : vector<1x32x16xbf16> to vector<32x16xbf16>
    %cst_15 = arith.constant dense<0.000000e+00> : vector<8x16xf32>
    %18 = tpu.matmul %15, %17, %cst_15 {dimension_numbers = #tpu.dot_dimension_numbers<[1], [0], [0], [1], [0, 0, 1, 1], [], []>} : vector<8x32xbf16>, vector<32x16xbf16>, vector<8x16xf32> -> vector<8x16xf32>
    %c0_16 = arith.constant 0 : index
    %c0_17 = arith.constant 0 : index
    %c0_18 = arith.constant 0 : index
    %19 = vector.load %arg8[%c0_16, %c0_17, %c0_18] : memref<1x1x16xf32, #tpu.memory_space<vmem>>, vector<1x1x16xf32>
    %20 = vector.shape_cast %19 : vector<1x1x16xf32> to vector<1x16xf32>
    %21 = vector.broadcast %20 : vector<1x16xf32> to vector<8x16xf32>
    %22 = arith.addf %18, %21 : vector<8x16xf32>
    %23 = vector.extract_strided_slice %22 {offsets = [0, 0], sizes = [8, 8], strides = [1, 1]} : vector<8x16xf32> to vector<8x8xf32>
    %24 = vector.extract_strided_slice %22 {offsets = [0, 8], sizes = [8, 8], strides = [1, 1]} : vector<8x16xf32> to vector<8x8xf32>
    %25 = arith.truncf %12 : vector<8x8xf32> to vector<8x8xbf16>
    %26 = arith.truncf %23 : vector<8x8xf32> to vector<8x8xbf16>
    %cst_19 = arith.constant dense<0.000000e+00> : vector<8x8xf32>
    %27 = tpu.matmul %25, %26, %cst_19 {dimension_numbers = #tpu.dot_dimension_numbers<[1], [1], [0], [0], [0, 0, 1, 0], [], []>} : vector<8x8xbf16>, vector<8x8xbf16>, vector<8x8xf32> -> vector<8x8xf32>
    %cst_20 = arith.constant dense<0xFF800000> : vector<8xf32>
    %28 = vector.multi_reduction <maximumf>, %27, %cst_20 [1] : vector<8x8xf32> to vector<8xf32>
    %29 = vector.shape_cast %28 : vector<8xf32> to vector<8x1xf32>
    %30 = vector.broadcast %29 : vector<8x1xf32> to vector<8x8xf32>
    %31 = arith.subf %27, %30 : vector<8x8xf32>
    %32 = math.exp %31 : vector<8x8xf32>
    %cst_21 = arith.constant dense<0.000000e+00> : vector<8xf32>
    %33 = vector.multi_reduction <add>, %32, %cst_21 [1] : vector<8x8xf32> to vector<8xf32>
    %34 = vector.shape_cast %33 : vector<8xf32> to vector<8x1xf32>
    %35 = tpu.reciprocal %34 {approx = true} : vector<8x1xf32> -> vector<8x1xf32>
    %36 = arith.mulf %34, %35 : vector<8x1xf32>
    %cst_22 = arith.constant 2.000000e+00 : f32
    %37 = vector.broadcast %cst_22 : f32 to vector<8x1xf32>
    %38 = arith.subf %37, %36 : vector<8x1xf32>
    %39 = arith.mulf %35, %38 : vector<8x1xf32>
    %40 = vector.broadcast %39 : vector<8x1xf32> to vector<8x8xf32>
    %41 = arith.mulf %32, %40 : vector<8x8xf32>
    %c0_23 = arith.constant 0 : index
    %c0_24 = arith.constant 0 : index
    %c0_25 = arith.constant 0 : index
    %42 = vector.load %arg12[%c0_23, %c0_24, %c0_25] : memref<1x8x8xf32, #tpu.memory_space<vmem>>, vector<1x8x8xf32>
    %43 = vector.shape_cast %42 : vector<1x8x8xf32> to vector<8x8xf32>
    %44 = arith.addf %43, %41 : vector<8x8xf32>
    %c0_26 = arith.constant 0 : index
    %c0_27 = arith.constant 0 : index
    %c0_28 = arith.constant 0 : index
    %45 = vector.load %arg12[%c0_26, %c0_27, %c0_28] : memref<1x8x8xf32, #tpu.memory_space<vmem>>, vector<1x8x8xf32>
    %46 = vector.shape_cast %45 : vector<1x8x8xf32> to vector<8x8xf32>
    %47 = vector.shape_cast %44 : vector<8x8xf32> to vector<1x8x8xf32>
    tpu.vector_store %arg12[%c0_26, %c0_27, %c0_28], %47 {strides = array<i32>} : memref<1x8x8xf32, #tpu.memory_space<vmem>>, vector<1x8x8xf32>,
    %48 = arith.truncf %41 : vector<8x8xf32> to vector<8x8xbf16>
    %49 = arith.truncf %24 : vector<8x8xf32> to vector<8x8xbf16>
    %cst_29 = arith.constant dense<0.000000e+00> : vector<8x8xf32>
    %50 = tpu.matmul %48, %49, %cst_29 {dimension_numbers = #tpu.dot_dimension_numbers<[1], [0], [0], [1], [0, 0, 1, 1], [], []>} : vector<8x8xbf16>, vector<8x8xbf16>, vector<8x8xf32> -> vector<8x8xf32>
    %c0_30 = arith.constant 0 : index
    %c0_31 = arith.constant 0 : index
    %51 = vector.load %arg13[%c0_30, %c0_31] : memref<8x32xf32, #tpu.memory_space<vmem>>, vector<8x32xf32>
    %52 = arith.truncf %50 : vector<8x8xf32> to vector<8x8xbf16>
    %c0_32 = arith.constant 0 : index
    %c0_33 = arith.constant 0 : index
    %c0_34 = arith.constant 0 : index
    %53 = vector.load %arg9[%c0_32, %c0_33, %c0_34] : memref<1x8x32xbf16, #tpu.memory_space<vmem>>, vector<1x8x32xbf16>
    %54 = vector.shape_cast %53 : vector<1x8x32xbf16> to vector<8x32xbf16>
    %cst_35 = arith.constant dense<0.000000e+00> : vector<8x32xf32>
    %55 = tpu.matmul %52, %54, %cst_35 {dimension_numbers = #tpu.dot_dimension_numbers<[1], [0], [0], [1], [0, 0, 1, 1], [], []>} : vector<8x8xbf16>, vector<8x32xbf16>, vector<8x32xf32> -> vector<8x32xf32>
    %56 = arith.addf %51, %55 : vector<8x32xf32>
    %c0_36 = arith.constant 0 : index
    %c0_37 = arith.constant 0 : index
    %57 = vector.load %arg13[%c0_36, %c0_37] : memref<8x32xf32, #tpu.memory_space<vmem>>, vector<8x32xf32>
    tpu.vector_store %arg13[%c0_36, %c0_37], %56 {strides = array<i32>} : memref<8x32xf32, #tpu.memory_space<vmem>>, vector<8x32xf32>,
    %c3_i32 = arith.constant 3 : i32
    %58 = arith.cmpi eq, %arg2, %c3_i32 : i32
    %59 = arith.extui %58 : i1 to i32
    %c0_i32_38 = arith.constant 0 : i32
    %60 = arith.cmpi ne, %59, %c0_i32_38 : i32
    scf.if %60 {
      %c0_39 = arith.constant 0 : index
      %c0_40 = arith.constant 0 : index
      %61 = vector.load %arg13[%c0_39, %c0_40] : memref<8x32xf32, #tpu.memory_space<vmem>>, vector<8x32xf32>
      %c0_41 = arith.constant 0 : index
      %c0_42 = arith.constant 0 : index
      %62 = vector.load %arg10[%c0_41, %c0_42] : memref<1x32xf32, #tpu.memory_space<vmem>>, vector<1x32xf32>
      %63 = vector.broadcast %62 : vector<1x32xf32> to vector<8x32xf32>
      %64 = arith.addf %61, %63 : vector<8x32xf32>
      %c0_43 = arith.constant 0 : index
      %c0_44 = arith.constant 0 : index
      %c0_45 = arith.constant 0 : index
      %65 = vector.load %arg11[%c0_43, %c0_44, %c0_45] : memref<1x8x32xf32, #tpu.memory_space<vmem>>, vector<1x8x32xf32>
      %66 = vector.shape_cast %65 : vector<1x8x32xf32> to vector<8x32xf32>
      %67 = vector.shape_cast %64 : vector<8x32xf32> to vector<1x8x32xf32>
      tpu.vector_store %arg11[%c0_43, %c0_44, %c0_45], %67 {strides = array<i32>} : memref<1x8x32xf32, #tpu.memory_space<vmem>>, vector<1x8x32xf32>,
      %c0_46 = arith.constant 0 : index
      %c0_47 = arith.constant 0 : index
      %c0_48 = arith.constant 0 : index
      %68 = vector.load %arg12[%c0_46, %c0_47, %c0_48] : memref<1x8x8xf32, #tpu.memory_space<vmem>>, vector<1x8x8xf32>
      %69 = vector.shape_cast %68 : vector<1x8x8xf32> to vector<8x8xf32>
      %cst_49 = arith.constant 2.500000e-01 : f32
      %70 = vector.broadcast %cst_49 : f32 to vector<8x8xf32>
      %71 = arith.mulf %69, %70 : vector<8x8xf32>
      %c0_50 = arith.constant 0 : index
      %c0_51 = arith.constant 0 : index
      %c0_52 = arith.constant 0 : index
      %72 = vector.load %arg12[%c0_50, %c0_51, %c0_52] : memref<1x8x8xf32, #tpu.memory_space<vmem>>, vector<1x8x8xf32>
      %73 = vector.shape_cast %72 : vector<1x8x8xf32> to vector<8x8xf32>
      %74 = vector.shape_cast %71 : vector<8x8xf32> to vector<1x8x8xf32>
      tpu.vector_store %arg12[%c0_50, %c0_51, %c0_52], %74 {strides = array<i32>} : memref<1x8x8xf32, #tpu.memory_space<vmem>>, vector<1x8x8xf32>,
    } else {
    }
    return
  }
  func.func @transform_0(%arg0: i32, %arg1: i32, %arg2: i32) -> (i32, i32, i32) {
    %c0_i32 = arith.constant 0 : i32
    %c0_i32_0 = arith.constant 0 : i32
    return %arg0, %arg1, %c0_i32 : i32, i32, i32
  }
  func.func @transform_1(%arg0: i32, %arg1: i32, %arg2: i32) -> (i32, i32, i32) {
    %c0_i32 = arith.constant 0 : i32
    %c0_i32_0 = arith.constant 0 : i32
    %c0_i32_1 = arith.constant 0 : i32
    return %arg0, %c0_i32, %c0_i32_0 : i32, i32, i32
  }
  func.func @transform_2(%arg0: i32, %arg1: i32, %arg2: i32) -> (i32, i32, i32) {
    %c0_i32 = arith.constant 0 : i32
    %c0_i32_0 = arith.constant 0 : i32
    %c0_i32_1 = arith.constant 0 : i32
    return %arg2, %c0_i32, %c0_i32_0 : i32, i32, i32
  }
  func.func @transform_3(%arg0: i32, %arg1: i32, %arg2: i32) -> (i32, i32, i32) {
    %c0_i32 = arith.constant 0 : i32
    %c0_i32_0 = arith.constant 0 : i32
    %c0_i32_1 = arith.constant 0 : i32
    return %arg2, %c0_i32, %c0_i32_0 : i32, i32, i32
  }
  func.func @transform_4(%arg0: i32, %arg1: i32, %arg2: i32) -> (i32, i32, i32) {
    %c0_i32 = arith.constant 0 : i32
    %c0_i32_0 = arith.constant 0 : i32
    %c0_i32_1 = arith.constant 0 : i32
    return %arg2, %c0_i32, %c0_i32_0 : i32, i32, i32
  }
  func.func @transform_5(%arg0: i32, %arg1: i32, %arg2: i32) -> (i32, i32, i32) {
    %c0_i32 = arith.constant 0 : i32
    %c0_i32_0 = arith.constant 0 : i32
    %c0_i32_1 = arith.constant 0 : i32
    return %arg2, %c0_i32, %c0_i32_0 : i32, i32, i32
  }
  func.func @transform_6(%arg0: i32, %arg1: i32, %arg2: i32) -> (i32, i32, i32) {
    %c0_i32 = arith.constant 0 : i32
    %c0_i32_0 = arith.constant 0 : i32
    %c0_i32_1 = arith.constant 0 : i32
    return %arg2, %c0_i32, %c0_i32_0 : i32, i32, i32
  }
  func.func @transform_7(%arg0: i32, %arg1: i32, %arg2: i32) -> (i32, i32) {
    %c0_i32 = arith.constant 0 : i32
    %c0_i32_0 = arith.constant 0 : i32
    %c0_i32_1 = arith.constant 0 : i32
    return %c0_i32, %c0_i32_0 : i32, i32
  }
  func.func @transform_8(%arg0: i32, %arg1: i32, %arg2: i32) -> (i32, i32, i32) {
    %c0_i32 = arith.constant 0 : i32
    %c0_i32_0 = arith.constant 0 : i32
    return %arg0, %arg1, %c0_i32 : i32, i32, i32
  }
  func.func @transform_9(%arg0: i32, %arg1: i32, %arg2: i32) -> (i32, i32, i32) {
    %c0_i32 = arith.constant 0 : i32
    %c0_i32_0 = arith.constant 0 : i32
    return %arg0, %arg1, %c0_i32 : i32, i32, i32
  }
}

</mosaic_0001>

<bundles_post_ra>
// kernel: tpu_custom_call.1
= control target key start
LH: loop header
LB: loop body
LE: loop exit
PB: predicated region body
PF: predicated region fallthrough
CT: control target
= control target key end

     0   :  { %s1390_s0 = inlined_call_operand.vmem [shape: f32[2,8,32], index: 0, kind: input, shape index: {}]   ;;  %s1391_s1 = inlined_call_operand.vmem [shape: f32[2,8,32], index: 1, kind: input, shape index: {}]   ;;  %s1392_s2 = inlined_call_operand.vmem [shape: bf16[4,32,8], index: 2, kind: input, shape index: {}]   ;;  %s1393_s3 = inlined_call_operand.vmem [shape: f32[4,1,8], index: 3, kind: input, shape index: {}]   ;;  %s1394_s4 = inlined_call_operand.vmem [shape: bf16[4,32,16], index: 4, kind: input, shape index: {}]   ;;  %s1395_s5 = inlined_call_operand.vmem [shape: f32[4,1,16], index: 5, kind: input, shape index: {}]   ;;  %s1396_s6 = inlined_call_operand.vmem [shape: bf16[4,8,32], index: 6, kind: input, shape index: {}]   ;;  %s1397_s7 = inlined_call_operand.vmem [shape: f32[1,32], index: 7, kind: input, shape index: {}]   ;;  %s1398_s8 = inlined_call_operand.hbm [shape: f32[2,8,32], index: 8, kind: output, shape index: {0}]   ;;  %s1399_s9 = inlined_call_operand.hbm [shape: f32[2,8,8], index: 9, kind: output, shape index: {1}]  }
   0x1   :  { %1413 = sst [smem:[#allocation20_spill]] %s1390_s0 }
   0x2   :  { %1414 = sst [smem:[#allocation21_spill]] %s1398_s8 }
   0x3   :  { %1415 = sst [smem:[#allocation22_spill]] %s1399_s9 }
   0x4   :  { %15 = vsyncpa [#allocation4], 0 }
   0x5   :  { %17 = vsyncpa [#allocation4 + $0x1], 0 }
   0x6   :  { %18 = vsyncpa [#allocation6], 0 }
   0x7   :  { %20 = vsyncpa [#allocation6 + $0x1], 0  ;;  %s1190_s30 = smov 0   ;;  %s1192_s10 = smov 0  }
   0x8   :  { %s1194_s11 = smov 0   ;;  %s1196_s12 = smov 0  }
   0x9   :  { %s1198_s13 = smov 0   ;;  %s1200_s14 = smov 0  }
   0xa   :  { %s1202_s15 = smov 0   ;;  %s1204_s16 = smov 0  }
   0xb LB: > { %1416 = sst [smem:[#allocation9_spill]] %s1108_s30  ;;  %s876_s17 = sadd.s32 4294967295, %s1136_s16   ;;  %s1136_s16 = sphi %s1204_s16, %s26_s16   ;;  %s1132_s15 = sphi %s1202_s15, %s1442_s15   ;;  %s1128_s14 = sphi %s1200_s14, %s1441_s14   ;;  %s1124_s13 = sphi %s1198_s13, %s1440_s13   ;;  %s1120_s12 = sphi %s1196_s12, %s1439_s12   ;;  %s1116_s11 = sphi %s1194_s11, %s1438_s11   ;;  %s1112_s10 = sphi %s1192_s10, %s1437_s10   ;;  %s1108_s30 = sphi %s1190_s30, %s1436_s30  }
   0xc   : > { %1417 = sst [smem:[#allocation10_spill]] %s1112_s10  ;;  %s877_s18 = sadd.s32 4294967294, %s1136_s16  }
   0xd   : > { %1418 = sst [smem:[#allocation11_spill]] %s1116_s11  ;;  %s38_s19 = sadd.s32 1, %s1128_s14 }
   0xe   : > { %1419 = sst [smem:[#allocation12_spill]] %s1128_s14  ;;  %p39_p0 = scmp.ge.s32.totalorder %s38_s19, 4 }
   0xf   : > { %1420 = sst [smem:[#allocation13_spill]] %s1132_s15  ;;  %s45_s20 = sadd.s32 1, %s1132_s15 }
  0x10   : > { %1421 = sst [smem:[#allocation14_spill]] %s1136_s16  ;;  %p269_p1 = scmp.ne.s32.totalorder %s1116_s11, %s1112_s10 }
  0x11   : > { %p270_p2 = scmp.eq.s32.totalorder %s876_s17, 7  ;;  %s1444_s19 = smov (%p39_p0, %s38_s19), 0 }
  0x12   : > { %1422 = sst [smem:[#allocation15_spill]] %s1444_s19  ;;  %s1446_s20 = smov (!%p39_p0, %s45_s20), %s1132_s15 }
  0x13   : > { %p1239_p3 = por %p270_p2, %p269_p1  ;;  %p275_p4 = scmp.ne.s32.totalorder %s1112_s10, %s1108_s30 }
  0x14   : > { %p47_p5 = scmp.ge.s32.totalorder %s1446_s20, 2  ;;  %p276_p6 = scmp.eq.s32.totalorder %s877_s18, 7 }
  0x15   : > { %s1423_s21 = scalar_select %p1239_p3, 1, 0 }
  0x16   : > { %p880_p7 = scmp.ge.s32.totalorder %s1136_s16, 1  ;;  %p377_p8 = scmp.lt.s32.totalorder %s1136_s16, 9 }
  0x17   : > { %1424 = sst [smem:[#allocation16_spill]] %s1423_s21  ;;  %s1448_s20 = smov (%p47_p5, %s1446_s20), 0 }
  0x18   : > { %1425 = sst [smem:[#allocation17_spill]] %s1448_s20  ;;  %p1249_p9 = por %p276_p6, %p275_p4 }
  0x19   : > { %p378_p10 = pnand %p880_p7, %p377_p8  ;;  %s254_s23 = ssub.s32 %s1132_s15, %s1448_s20 }
  0x1a   : > { %s1426_s22 = scalar_select %p1249_p9, 1, 0 }
  0x1b   : > { %s259_s24 = sadd.s32 1, %s1116_s11  ;;  %p257_p11 = scmp.eq.s32.totalorder %s254_s23, 0 }
  0x1c   : > { %1427 = sst [smem:[#allocation18_spill]] %s1426_s22  ;;  %381 = sbr.rel (%p378_p10) target bundleno = 912 (0x390), region = 52 }
  0x1d   : > { %s1257_s25 = scalar_select %p257_p11, %s1116_s11, %s259_s24  }
  0x1e   : > { %s1260_s26 = sand.u32 (!%p378_p10), 1, %s1112_s10   ;;  %p444_p12 = scmp.lt.s32.totalorder (!%p378_p10), %s1124_s13, 1 }
  0x1f   : > { %1428 = sst [smem:[#allocation19_spill]] %s1257_s25  ;;  %s881_s27 = sshll.u32 (!%p378_p10), %s1260_s26, 3 }
  0x20   : > { %p455_p13 = scmp.lt.s32.totalorder (!%p378_p10), %s1120_s12, 3  ;;  %s1429_s0 = sld [smem:[#allocation20_spill]] (!%p378_p10) }
  0x21   : > { %s445_s28 = scalar_select %p444_p12, %s1124_s13, 1 }
  0x22   : > { %s1267_s29 = scalar_select %p455_p13, %s1120_s12, 3 }
  0x23   : > { %s883_s17 = sshll.u32 %s445_s28, 3  ;;  %s1296_s11 = scalar_lea.vmem [#allocation3], %s881_s27 }
  0x24   : > { %s454_s15 = scalar_lea.vmem %s1391_s1, %s883_s17  ;;  %s919_s14 = sshll.u32 %s1267_s29, 4 }
  0x25   : > { %s462_s10 = scalar_lea.vmem %s1393_s3, %s1267_s29  ;;  %s459_s16 = scalar_lea.vmem %s1392_s2, %s919_s14 }
  0x26   : > { %s450_s24 = scalar_lea.vmem %s1429_s0, %s883_s17  ;;  %s467_s28 = scalar_lea.vmem %s1394_s4, %s919_s14 }
  0x27   : > { %s470_s23 = scalar_lea.vmem %s1395_s5, %s1267_s29  ;;  %s889_s0 = sshll.u32 %s1267_s29, 2 }
  0x28   : > { %s1294_s17 = scalar_lea.vmem %s1396_s6, %s889_s0  ;;  %s1298_s25 = scalar_lea.vmem [#allocation5], %s881_s27 }
  0x29   : > { %p890_p0 = scmp.ne.s32.totalorder %s1120_s12, 0 }
  0x2b   : > { %479 = sbr.rel (%p890_p0) target bundleno = 51 (0x33), region = 56 }
  0x30   : > { %vm480_vm0 = vcmask 261120   ;;  %vm482_vm1 = vcmask 64512   ;;  %v1138_v0 = vmov 0.0  }
  0x31   : > { %481 = vst.msk [vmem:[#allocation2] sm:$0xff] %vm480_vm0, %v1138_v0 }
  0x32   : > { %483 = vst.msk [vmem:[%s1298_s25] sm:$0xff] %vm482_vm1, %v1138_v0 }
  0x33 PF: > { %v922_v1 = vld [vmem:[%s459_s16 + $0x8] sm:$0xff]  ;;  %v921_v3 = vld [vmem:[%s459_s16] sm:$0xff]  ;;  %vm506_vm2 = vcmask 261120   ;;  %vm563_vm3 = vcmask 64512   ;;  %s1139_s9 = smov 120   ;;  %vm607_vm4 = vcmask 1043456  }
  0x34   : > { %v924_v2 = vld [vmem:[%s467_s28 + $0x8] sm:$0xff]  ;;  %v923_v4 = vld [vmem:[%s467_s28] sm:$0xff]  ;;  %516 = vmatpush.bf16.msra.mxu0 %v922_v1  ;;  %p912_p1 = scmp.ne.s32.totalorder %s1120_s12, 3 }
  0x35   : > { %v484_v5 = vld [vmem:[%s450_s24] sm:$0xff]  ;;  %554 = vmatpush.bf16.msra.mxu1 %v924_v2 }
  0x36   : > { %v523_v6 = vld [vmem:[%s454_s15] sm:$0xff]  ;;  %v485_v7 = vpack.c.bf16 %v484_v5, %v484_v5 }
  0x37   : > { %v524_v8 = vpack.c.bf16 %v523_v6, %v523_v6  ;;  %v1004_v9 = vld [vmem:[%s470_s23] ss:$0 sm:$0xff] }
  0x38   : > { %517 = vmatpush.bf16.msra.mxu0 %v921_v3  ;;  %v1003_v12 = vld [vmem:[%s462_s10] ss:$0 sm:$0xff] }
  0x39   : > { %555 = vmatpush.bf16.msra.mxu1 %v923_v4  ;;  %v626_v30 = vld [vmem:[%s1294_s17] sm:$0xf] }
  0x3a   : > { %v631_v31 = vsel %vm607_vm4, %v626_v30, 0  ;;  %v597_v37 = vld [vmem:[%s1298_s25] sm:$0xff] }
  0x3b   : > { %899 = vmatmul.msk.bf16.vlgmr.msra.gmra.mxu0 %vm506_vm2, %v485_v7  ;;  %v624_v44 = vld [vmem:[#allocation2] sm:$0xff] }
  0x3c   : > { %908 = vmatmul.msk.bf16.vlgmr.msra.gmra.mxu1 %vm506_vm2, %v524_v8 }
  0xb8   : > { %v519_v10 = vpop.f32.mrf.mxu0 }
  0xb9   : > { %v557_v11 = vpop.f32.mrf.mxu1  ;;  %v520_v15 = vadd.f32 %v1003_v12, %v519_v10 }
  0xba   : > { %v558_v13 = vadd.f32 %v1004_v9, %v557_v11 }
  0xbb   : > { %v561_v19 = vpack.c.bf16 %v520_v15, %v520_v15 }
  0xbc   : > { %v562_v14 = vpack.c.bf16 %v558_v13, %v558_v13 }
  0xbe   : > { %602 = vrot.lane.b32.xlu1 %v562_v14, %s1139_s9  ;;  %v568_v16 = vsel %vm563_vm3, %v562_v14, 0 }
  0xbf   : > { %577 = vmatpush.bf16.xpose.msra.mxu2 %v568_v16 }
  0xc0   : > { %v521_v17 = vpop.f32.mrf.mxu0 }
  0xc1   : > { %v559_v18 = vpop.f32.mrf.mxu1 }
  0xc6   : > { %909 = vmatmul.msk.bf16.vlgmr.msra.gmra.mxu2 %vm563_vm3, %v561_v19 }
 0x130   : > { %v603_v20 = vpop.permute.xlu1 %602 }
 0x131   : > { %v609_v21 = vsel %vm607_vm4, %v603_v20, 0 }
 0x132   : > { %618 = vmatpush.bf16.msra.mxu3 %v609_v21 }
 0x136   : > { %640 = vmatpush.bf16.msrb.mxu3 %v631_v31 }
 0x149   : > { %v579_v22 = vpop.f32.mrf.mxu2 }
 0x14a   : > { %v583_v23 = vsel %vm563_vm3, %v579_v22, -inf }
 0x14b   : > { %584 = vmax.xlane.f32.xlu0 %v583_v23 }
 0x151   : > { %v581_v24 = vpop.f32.mrf.mxu2 }
 0x1be   : > { %v585_v25 = vpop.xlane.xlu0 %584 }
 0x1bf   : > { %v586_v26 = vsub.f32 %v579_v22, %v585_v25 }
 0x1c1   : > { %v587_v27 = vmul.f32 1.442695, %v586_v26 }
 0x1c3   : > { %1005 = vpow2.f32 %v587_v27 }
 0x1c9   : > { %v1006_v28 = vpop.eup %1005 }
 0x1ca   : > { %v589_v29 = vsel %vm563_vm3, %v1006_v28, 0.0 }
 0x1cb   : > { %590 = vadd.xlane.f32.xlu0 %v589_v29 }
 0x23e   : > { %v591_v32 = vpop.xlane.xlu0 %590 }
 0x23f   : > { %1007 = vrcp.f32 %v591_v32 }
 0x245   : > { %v1008_v33 = vpop.eup %1007 }
 0x246   : > { %v593_v34 = vmul.f32 %v1008_v33, %v591_v32 }
 0x248   : > { %v594_v35 = vsub.f32 2.0, %v593_v34 }
 0x24a   : > { %v595_v36 = vmul.f32 %v1008_v33, %v594_v35 }
 0x24c   : > { %v596_v38 = vmul.f32 %v1006_v28, %v595_v36 }
 0x24e   : > { %v598_v39 = vadd.f32 %v597_v37, %v596_v38  ;;  %v600_v40 = vpack.c.bf16 %v596_v38, %v596_v38 }
 0x250   : > { %599 = vst.msk [vmem:[%s1298_s25] sm:$0xff] %vm563_vm3, %v598_v39  ;;  %910 = vmatmul.msk.bf16.vlgmr.msra.gmra.mxu3 %vm563_vm3, %v600_v40 }
 0x2d3   : > { %v620_v41 = vpop.f32.mrf.mxu3 }
 0x2d4   : > { %v625_v42 = vpack.c.bf16 %v620_v41, %v620_v41 }
 0x2d6   : > { %911 = vmatmul.msk.bf16.vlgmr.msrb.gmra.mxu3 %vm563_vm3, %v625_v42 }
 0x2db   : > { %v622_v43 = vpop.f32.mrf.mxu3 }
 0x359   : > { %v642_v45 = vpop.f32.mrf.mxu3 }
 0x35a   : > { %v646_v46 = vadd.f32 %v642_v45, %v624_v44 }
 0x35c   : > { %647 = vst.msk [vmem:[#allocation2] sm:$0xff] %vm506_vm2, %v646_v46 }
 0x35d   : > { %651 = sbr.rel (%p912_p1) target bundleno = 872 (0x368), region = 60 }
 0x361   : > { %v644_v47 = vpop.f32.mrf.mxu3 }
 0x362   : > { %v1009_v49 = vld [vmem:[%s1397_s7] ss:$0 sm:$0xff] }
 0x363   : > { %v652_v48 = vld [vmem:[#allocation2] sm:$0xff] }
 0x364   : > { %v659_v50 = vld [vmem:[%s1298_s25] sm:$0xff]  ;;  %v657_v51 = vadd.f32 %v1009_v49, %v652_v48 }
 0x365   : > { %v660_v52 = vmul.f32 0.25, %v659_v50 }
 0x366   : > { %658 = vst.msk [vmem:[%s1296_s11] sm:$0xff] %vm506_vm2, %v657_v51 }
 0x367   : > { %661 = vst.msk [vmem:[%s1298_s25] sm:$0xff] %vm563_vm3, %v660_v52 }
 0x368 PF: > { %s915_s14 = sshll.u32 %s1124_s13, 3  ;;  %s1431_s21 = sld [smem:[#allocation21_spill]] }
 0x369   : > { %s681_s27 = sshll.u32 %s1296_s11, 4  ;;  %s663_s24 = scalar_lea.sflag [#allocation4], %s1260_s26  ;;  %s682_s27 = int_to_ptr.vmem [resolvable:$true] %s681_s27 }
 0x36e   : > { %s679_s22 = scalar_lea.hbm %s1431_s21, %s915_s14  ;;  %s1030_s13 = scalar_lea.hbm %s1431_s21, 16 }
 0x36f   : > { %s683_s29 = sshll.u32 %s679_s22, 4  ;;  %s684_s29 = int_to_ptr.hbm [resolvable:$true] %s683_s29 }
 0x370   : > { %s1024_s28 = sshra.s32 %s684_s29, 4  ;;  %s1025_s28 = int_to_ptr.hbm [resolvable:$true] %s1024_s28 }
 0x371   : > { %s1026_s18 = scalar_lea.hbm %s1025_s28, 8  ;;  %p1031_p6 = scmp.lt.s32.totalorder %s1025_s28, %s1431_s21 }
 0x372   : > { %p1027_p2 = scmp.ne.s32.totalorder %s1025_s28, %s1026_s18  ;;  %p1032_p7 = scmp.lt.s32.totalorder %s1030_s13, %s1026_s18 }
 0x374   : > { %p1028_p4 = pnand %p1027_p2, %p1239_p3  ;;  %p1033_p8 = por %p1032_p7, %p1031_p6 }
 0x376   : > { %p1029_p5 = pneg %p1028_p4 }
 0x378   : > { %p1034_p10 = pnand %p1033_p8, %p1029_p5 }
 0x37a   : > { %1037 = shalt.err (!%p1034_p10)
}
 0x37b   : > { %925 = dma.vmem_to_hbm [thread:$0]  (%p1239_p3), %s682_s27, 128, %s684_s29, %s663_s24  }
 0x37c   : > { %s1432_s8 = sld [smem:[#allocation22_spill]]  ;;  %s696_s30 = sshll.u32 %s1298_s25, 4  ;;  %s697_s30 = int_to_ptr.vmem [resolvable:$true] %s696_s30 }
 0x37d   : > { %s668_s15 = scalar_lea.sflag [#allocation6], %s1260_s26 }
 0x382   : > { %s694_s9 = scalar_lea.hbm %s1432_s8, %s915_s14  ;;  %s1058_s27 = scalar_lea.hbm %s1432_s8, 16 }
 0x383   : > { %s698_s10 = sshll.u32 %s694_s9, 4  ;;  %s699_s10 = int_to_ptr.hbm [resolvable:$true] %s698_s10 }
 0x384   : > { %s1052_s16 = sshra.s32 %s699_s10, 4  ;;  %s1053_s16 = int_to_ptr.hbm [resolvable:$true] %s1052_s16 }
 0x385   : > { %s1054_s22 = scalar_lea.hbm %s1053_s16, 8  ;;  %p1059_p0 = scmp.lt.s32.totalorder %s1053_s16, %s1432_s8 }
 0x386   : > { %p1055_p11 = scmp.ne.s32.totalorder %s1053_s16, %s1054_s22  ;;  %p1060_p1 = scmp.lt.s32.totalorder %s1058_s27, %s1054_s22 }
 0x388   : > { %p1056_p12 = pnand %p1055_p11, %p1239_p3  ;;  %p1061_p2 = por %p1060_p1, %p1059_p0 }
 0x38a   : > { %p1057_p13 = pneg %p1056_p12 }
 0x38c   : > { %p1062_p4 = pnand %p1061_p2, %p1057_p13 }
 0x38e   : > { %1065 = shalt.err (!%p1062_p4)
}
 0x38f   : > { %926 = dma.vmem_to_hbm [thread:$0]  (%p1239_p3), %s697_s30, 128, %s699_s10, %s668_s15  }
 0x390 PF: > { %s1433_s26 = sld [smem:[#allocation14_spill]] }
 0x391   : > { %s1434_s25 = sld [smem:[#allocation9_spill]] }
 0x396   : > { %p936_p5 = scmp.ge.s32.totalorder %s1433_s26, 2 }
 0x397   : > { %s710_s23 = sand.u32 1, %s1434_s25  }
 0x398   : > { %p930_p6 = pnand %p936_p5, %p1249_p9  ;;  %s711_s19 = scalar_lea.sflag [#allocation4], %s710_s23 }
 0x39a   : > { %p931_p7 = pneg %p930_p6 }
 0x39c   : > { %1099 = dma.done.wait (%p931_p7), %s711_s19, 128  }
 0x39d   : > { %1101 = vsyncadd (%p931_p7), %s711_s19, 4294967168  ;;  %s721_s13 = scalar_lea.sflag [#allocation6], %s710_s23 }
 0x39e   : > { %1103 = dma.done.wait (%p931_p7), %s721_s13, 128  }
 0x39f   : > { %1105 = vsyncadd (%p931_p7), %s721_s13, 4294967168  ;;  %s26_s16 = sadd.s32 1, %s1433_s26   ;;  %s1436_s30 = sld [smem:[#allocation10_spill]] }
 0x3a0   : > { %p23_p8 = scmp.ge.s32.totalorder %s26_s16, 10   ;;  %s1437_s10 = sld [smem:[#allocation11_spill]] }
 0x3a1   : > { %s1438_s11 = sld [smem:[#allocation19_spill]] }
 0x3a2   : > { %s1439_s12 = sld [smem:[#allocation12_spill]]  ;;  %25 = sbr.rel (!%p23_p8) target bundleno = 11 (0xb), region = 130 }
 0x3a3   : > { %s1440_s13 = sld [smem:[#allocation13_spill]] }
 0x3a4   : > { %s1441_s14 = sld [smem:[#allocation15_spill]] }
 0x3a5   : > { %s1442_s15 = sld [smem:[#allocation17_spill]] }
 0x3a7   :  { %727 = vsyncpa [#allocation4], 1 }
 0x3a8   :  { %729 = vsyncpa [#allocation4 + $0x1], 1 }
 0x3a9   :  { %730 = vsyncpa [#allocation6], 1 }
 0x3aa   :  { %732 = vsyncpa [#allocation6 + $0x1], 1 }

</bundles_post_ra>
